<compile_context>
chip_gen: v6e
topology: v6e:2x2x1
jax: 0.10.0
libtpu: 0.0.40
codegen_flags: <defaults>
</compile_context>

<pallas_src>
import functools

import jax
import jax.numpy as jnp
from jax.experimental import pallas as pl
from jax.experimental.pallas import tpu as pltpu


def _round_up(x, m):
    return (x + m - 1) // m * m


def _pick_tile(padded, align, cap):
    """Largest multiple of `align` that is <= cap and divides `padded`."""
    t = max(align, min(cap, padded))
    t -= t % align
    while padded % t:
        t -= align
    return t


def _embed_kernel(p_ref, w_ref, pos_ref, o_ref):
    # p_ref:   [tile_m, K_pad]   (bf16 patches, batch dim squeezed)
    # w_ref:   [K_pad, tile_n]   (bf16 weight, resident across inner steps)
    # pos_ref: [tile_m, tile_n]  (f32, position embedding + conv bias fused)
    # o_ref:   [tile_m, tile_n]
    acc = jnp.dot(p_ref[...], w_ref[...], preferred_element_type=jnp.float32)
    o_ref[...] = (acc + pos_ref[...]).astype(o_ref.dtype)


def siglip_vision_embeddings(x, conv_w, conv_b, pos_emb, patch_size, *,
                             compute_dtype=jnp.bfloat16, out_dtype=None):
    """x: [B, C, H, W] (NCHW). conv_w: [Hd, C, P, P]. conv_b: [Hd].
    pos_emb: [N, Hd] with N = (H/P)*(W/P).  Returns [B, N, Hd]."""
    B, C, H, W = x.shape
    P = patch_size
    Hd = conv_w.shape[0]
    nH, nW = H // P, W // P
    N = nH * nW
    K = C * P * P
    out_dtype = x.dtype if out_dtype is None else out_dtype

    # --- glue: cast first (halves the patchify HBM round-trip), then patchify.
    # Matches Conv2d(stride=kernel=P) + flatten(2).transpose(1, 2):
    # [B,C,nH,P,nW,P] -> [B,nH,nW,C,P,P] -> [B, N, K]  (K flattened (C,Ph,Pw)).
    # TODO(synk): pull patch extraction into the kernel via manual DMA of row
    #             slabs (memory_space=pl.ANY) to avoid materializing the patch
    #             matrix in HBM.
    xc = x.astype(compute_dtype)
    patches = xc.reshape(B, C, nH, P, nW, P)
    patches = patches.transpose(0, 2, 4, 1, 3, 5).reshape(B, N, K)

    # Weight [Hd, C, P, P] -> [K, Hd]; fold conv bias into the position emb.
    w_mat = conv_w.reshape(Hd, K).T.astype(compute_dtype)                 # [K, Hd]
    pos_fused = pos_emb.astype(jnp.float32) + conv_b.astype(jnp.float32)[None, :]

    # --- pad to lane/MXU-friendly shapes ---
    K_pad = _round_up(K, 128)
    Hd_pad = _round_up(Hd, 128)
    N_pad = _round_up(N, 8)
    tile_m = _pick_tile(N_pad, 8, 256)     # rows per MXU tile (<= 256)
    tile_n = _pick_tile(Hd_pad, 128, 512)  # lane-dense output width

    patches = jnp.pad(patches, ((0, 0), (0, N_pad - N), (0, K_pad - K)))
    w_mat = jnp.pad(w_mat, ((0, K_pad - K), (0, Hd_pad - Hd)))
    pos_fused = jnp.pad(pos_fused, ((0, N_pad - N), (0, Hd_pad - Hd)))

    # Grid order (hd_tile, batch, m_tile): the weight block index only depends
    # on the outermost axis, so it stays resident across all inner steps.
    grid = (Hd_pad // tile_n, B, N_pad // tile_m)

    out = pl.pallas_call(
        _embed_kernel,
        out_shape=jax.ShapeDtypeStruct((B, N_pad, Hd_pad), out_dtype),
        grid_spec=pltpu.PrefetchScalarGridSpec(
            num_scalar_prefetch=0,
            grid=grid,
            in_specs=[
                pl.BlockSpec((pl.Squeezed(), tile_m, K_pad),
                             lambda n, b, m: (b, m, 0)),        # patches
                pl.BlockSpec((K_pad, tile_n),
                             lambda n, b, m: (0, n)),           # weight (resident)
                pl.BlockSpec((tile_m, tile_n),
                             lambda n, b, m: (m, n)),           # pos + bias
            ],
            out_specs=pl.BlockSpec((pl.Squeezed(), tile_m, tile_n),
                                   lambda n, b, m: (b, m, n)),
        ),
        compiler_params=pltpu.CompilerParams(
            dimension_semantics=("parallel", "parallel", "parallel")),
    )(patches, w_mat, pos_fused)

    return out[:, :N, :Hd]


def reference(x, conv_w, conv_b, pos_emb, patch_size):
    """Pure-JAX f32 reference mirroring the PyTorch forward."""
    y = jax.lax.conv_general_dilated(
        x, conv_w,
        window_strides=(patch_size, patch_size),
        padding="VALID",
        dimension_numbers=("NCHW", "OIHW", "NCHW"),
    ) + conv_b[None, :, None, None]
    B, Hd, nH, nW = y.shape
    y = y.reshape(B, Hd, nH * nW).transpose(0, 2, 1)   # flatten(2).transpose(1,2)
    return y + pos_emb[None]


if __name__ == "__main__":
    # Small config consistent with the module:
    # num_channels=4, hidden_size=32, image_size=16, patch_size=4 -> 16 patches.
    B, C, IMG, P, HIDDEN = 2, 4, 16, 4, 32
    N = (IMG // P) ** 2

    key = jax.random.PRNGKey(0)
    kx, kw, kb, kp = jax.random.split(key, 4)
    x = jax.random.normal(kx, (B, C, IMG, IMG), dtype=jnp.float32)
    conv_w = jax.random.normal(kw, (HIDDEN, C, P, P), dtype=jnp.float32) * 0.02
    conv_b = jax.random.normal(kb, (HIDDEN,), dtype=jnp.float32) * 0.02
    pos_emb = jax.random.normal(kp, (N, HIDDEN), dtype=jnp.float32) * 0.02

    fwd = jax.jit(functools.partial(siglip_vision_embeddings, patch_size=P))
    out = fwd(x, conv_w, conv_b, pos_emb)
    jax.block_until_ready(out)

    ref = reference(x, conv_w, conv_b, pos_emb, P)
    assert out.shape == (B, N, HIDDEN), out.shape
    # bf16 MXU operands with f32 accumulation -> loosened tolerance.
    max_err = float(jnp.max(jnp.abs(out.astype(jnp.float32) - ref)))
    assert max_err < 2e-2, max_err

    print("KERNEL_OK")
</pallas_src>

<mosaic_0001>
module attributes {stable_mosaic.version = 11 : i64} {
  func.func @_embed_kernel(%arg0: i32, %arg1: i32, %arg2: i32, %arg3: memref<1x16x128xbf16, #tpu.memory_space<vmem>>, %arg4: memref<128x128xbf16, #tpu.memory_space<vmem>>, %arg5: memref<16x128xf32, #tpu.memory_space<vmem>>, %arg6: memref<1x16x128xf32, #tpu.memory_space<vmem>>) attributes {dimension_semantics = [#tpu.dimension_semantics<parallel>, #tpu.dimension_semantics<parallel>, #tpu.dimension_semantics<parallel>], iteration_bounds = array<i64: 1, 2, 1>, scalar_prefetch = 0 : i64, scratch_operands = 0 : i64, tpu.core_type = #tpu.core_type<tc>, window_params = [{transform_indices = @transform_0, window_bounds = array<i64: 1, 16, 128>}, {transform_indices = @transform_1, window_bounds = array<i64: 128, 128>}, {transform_indices = @transform_2, window_bounds = array<i64: 16, 128>}, {transform_indices = @transform_3, window_bounds = array<i64: 1, 16, 128>}]} {
    %c0 = arith.constant 0 : index
    %c0_0 = arith.constant 0 : index
    %c0_1 = arith.constant 0 : index
    %0 = vector.load %arg3[%c0, %c0_0, %c0_1] : memref<1x16x128xbf16, #tpu.memory_space<vmem>>, vector<1x16x128xbf16>
    %1 = vector.shape_cast %0 : vector<1x16x128xbf16> to vector<16x128xbf16>
    %c0_2 = arith.constant 0 : index
    %c0_3 = arith.constant 0 : index
    %2 = vector.load %arg4[%c0_2, %c0_3] : memref<128x128xbf16, #tpu.memory_space<vmem>>, vector<128x128xbf16>
    %cst = arith.constant dense<0.000000e+00> : vector<16x128xf32>
    %3 = tpu.matmul %1, %2, %cst {dimension_numbers = #tpu.dot_dimension_numbers<[1], [0], [0], [1], [0, 0, 1, 1], [], []>} : vector<16x128xbf16>, vector<128x128xbf16>, vector<16x128xf32> -> vector<16x128xf32>
    %c0_4 = arith.constant 0 : index
    %c0_5 = arith.constant 0 : index
    %4 = vector.load %arg5[%c0_4, %c0_5] : memref<16x128xf32, #tpu.memory_space<vmem>>, vector<16x128xf32>
    %5 = arith.addf %3, %4 : vector<16x128xf32>
    %c0_6 = arith.constant 0 : index
    %c0_7 = arith.constant 0 : index
    %c0_8 = arith.constant 0 : index
    %6 = vector.load %arg6[%c0_6, %c0_7, %c0_8] : memref<1x16x128xf32, #tpu.memory_space<vmem>>, vector<1x16x128xf32>
    %7 = vector.shape_cast %6 : vector<1x16x128xf32> to vector<16x128xf32>
    %8 = vector.shape_cast %5 : vector<16x128xf32> to vector<1x16x128xf32>
    tpu.vector_store %arg6[%c0_6, %c0_7, %c0_8], %8 {strides = array<i32>} : memref<1x16x128xf32, #tpu.memory_space<vmem>>, vector<1x16x128xf32>,
    return
  }
  func.func @transform_0(%arg0: i32, %arg1: i32, %arg2: i32) -> (i32, i32, i32) {
    %c0_i32 = arith.constant 0 : i32
    %c0_i32_0 = arith.constant 0 : i32
    return %arg1, %arg2, %c0_i32 : i32, i32, i32
  }
  func.func @transform_1(%arg0: i32, %arg1: i32, %arg2: i32) -> (i32, i32) {
    %c0_i32 = arith.constant 0 : i32
    %c0_i32_0 = arith.constant 0 : i32
    return %c0_i32, %arg0 : i32, i32
  }
  func.func @transform_2(%arg0: i32, %arg1: i32, %arg2: i32) -> (i32, i32) {
    %c0_i32 = arith.constant 0 : i32
    return %arg2, %arg0 : i32, i32
  }
  func.func @transform_3(%arg0: i32, %arg1: i32, %arg2: i32) -> (i32, i32, i32) {
    %c0_i32 = arith.constant 0 : i32
    return %arg1, %arg2, %arg0 : i32, i32, i32
  }
}

</mosaic_0001>

<bundles_post_ra>
// kernel: siglip_vision_embeddings.1
= control target key start
LH: loop header
LB: loop body
LE: loop exit
PB: predicated region body
PF: predicated region fallthrough
CT: control target
= control target key end

     0   :  { %8 = vsyncpa [#allocation3], 0  ;;  %s880_s0 = inlined_call_operand.vmem [shape: bf16[2,16,128], index: 0, kind: input, shape index: {}]   ;;  %s881_s1 = inlined_call_operand.vmem [shape: bf16[128,128], index: 1, kind: input, shape index: {}]   ;;  %s882_s2 = inlined_call_operand.vmem [shape: f32[16,128], index: 2, kind: input, shape index: {}]   ;;  %s883_s3 = inlined_call_operand.hbm [shape: f32[2,16,128], index: 3, kind: output, shape index: {}]  }
   0x1   :  { %10 = vsyncpa [#allocation3 + $0x1], 0  ;;  %s736_s12 = smov 0   ;;  %s738_s13 = smov 0  }
   0x2   :  { %s740_s14 = smov 0   ;;  %s742_s15 = smov 0  }
   0x3   :  { %s744_s16 = smov 0   ;;  %s746_s17 = smov 0  }
   0x4 LB: > { %s510_s18 = sadd.s32 4294967295, %s709_s17   ;;  %s511_s19 = sadd.s32 4294967294, %s709_s17   ;;  %s709_s17 = sphi %s746_s17, %s16_s17   ;;  %s705_s16 = sphi %s744_s16, %s890_s16   ;;  %s701_s15 = sphi %s742_s15, %s889_s15   ;;  %s697_s14 = sphi %s740_s14, %s888_s14   ;;  %s693_s13 = sphi %s738_s13, %s887_s13   ;;  %s689_s12 = sphi %s736_s12, %s886_s12  }
   0x5   : > { %s31_s20 = sadd.s32 1, %s705_s16  ;;  %s128_s21 = sadd.s32 1, %s697_s14 }
   0x6   : > { %p33_p0 = scmp.ge.s32.totalorder %s31_s20, 2  ;;  %p138_p1 = scmp.ne.s32.totalorder %s697_s14, %s693_s13 }
   0x7   : > { %p139_p2 = scmp.eq.s32.totalorder %s510_s18, 1  ;;  %p144_p3 = scmp.ne.s32.totalorder %s693_s13, %s689_s12 }
   0x8   : > { %s892_s20 = smov (%p33_p0, %s31_s20), 0  ;;  %p145_p5 = scmp.eq.s32.totalorder %s511_s19, 1 }
   0x9   : > { %p776_p4 = por %p139_p2, %p138_p1  ;;  %s121_s23 = ssub.s32 %s705_s16, %s892_s20 }
   0xa   : > { %p516_p6 = scmp.ge.s32.totalorder %s709_s17, 1  ;;  %p126_p7 = scmp.eq.s32.totalorder %s121_s23, 0 }
   0xb   : > { %p783_p8 = por %p145_p5, %p144_p3  ;;  %p195_p9 = scmp.lt.s32.totalorder %s709_s17, 3 }
   0xc   : > { %s789_s25 = scalar_select %p126_p7, %s697_s14, %s128_s21  }
   0xd   : > { %p196_p10 = pnand %p516_p6, %p195_p9 }
   0xe   : > { %p236_p11 = scmp.lt.s32.totalorder (!%p196_p10), %s701_s15, 1  ;;  %s535_s10 = sshll.u32 (!%p196_p10), %s701_s15, 8 }
   0xf   : > { %199 = sbr.rel (%p196_p10) target bundleno = 266 (0x10a), region = 32  ;;  %s833_s21 = scalar_lea.hbm (!%p196_p10), %s883_s3, %s535_s10 }
  0x10   : > { %s713_s26 = smov (!%p196_p10), [#allocation2]  }
  0x11   : > { %s637_s27 = sshll.u32 (!%p196_p10), %s713_s26, 4  ;;  %s638_s27 = int_to_ptr.vmem [resolvable:$false] %s637_s27 }
  0x12   : > { %s639_s28 = scalar_lea.vmem (!%p196_p10), %s638_s27, 512 }
  0x14   : > { %v624_v0 = vld [vmem:[%s881_s1 + $0x38] sm:$0xff]   ;;  %v711_v1 = vmov 0.0   ;;  %v625_v2 = vld [vmem:[%s881_s1 + $0x30] sm:$0xff]   ;;  %vm712_vm0 = vmmov 0   ;;  %s237_s30 = scalar_select %p236_p11, %s701_s15, 1  ;;  %v626_v3 = vld [vmem:[%s881_s1 + $0x28] sm:$0xff]  }
  0x15   : > { %545 = vmatprep.subr.bf16.mxu0 %v711_v1  ;;  %561 = vmatprep.mubr.msk.bf16.mxu0 %vm712_vm0, %v711_v1  ;;  %v627_v4 = vld [vmem:[%s881_s1 + $0x20] sm:$0xff]   ;;  %v628_v5 = vld [vmem:[%s881_s1 + $0x18] sm:$0xff]   ;;  %v629_v6 = vld [vmem:[%s881_s1 + $0x10] sm:$0xff]  }
  0x16   : > { %546 = vmatpush3.bf16.msra.mxu0 %v624_v0  ;;  %s534_s6 = sshll.u32 %s237_s30, 3  ;;  %v630_v7 = vld [vmem:[%s881_s1 + $0x8] sm:$0xff]   ;;  %v631_v8 = vld [vmem:[%s881_s1] sm:$0xff]   ;;  %s232_s30 = sand.u32 1, %s693_s13  }
  0x17   : > { %547 = vmatprep.subr.bf16.mxu0 %v711_v1  ;;  %s243_s9 = scalar_lea.vmem %s880_s0, %s534_s6  ;;  %s517_s4 = sshll.u32 %s232_s30, 4  ;;  %v278_v10 = vld [vmem:[%s882_s2] sm:$0xff]  ;;  %v279_v14 = vld [vmem:[%s882_s2 + $0x8] sm:$0xff] }
  0x18   : > { %v632_v9 = vld [vmem:[%s243_s9] sm:$0xff]   ;;  %s234_s7 = scalar_lea.vmem [#allocation2], %s517_s4  ;;  %s835_s15 = scalar_lea.sflag [#allocation3], %s232_s30 }
  0x19   : > { %s394_s8 = sshll.u32 %s234_s7, 4  ;;  %s828_s8 = int_to_ptr.vmem [resolvable:$true] %s394_s8 }
  0x1a   : > { %548 = vmatpush3.bf16.msra.mxu0 %v625_v2  ;;  %s633_s23 = scalar_lea.vmem %s828_s8, 256  ;;  %p640_p1 = scmp.lt.s32.totalorder %s828_s8, %s638_s27 }
  0x1b   : > { %549 = vmatprep.subr.bf16.mxu0 %v711_v1  ;;  %p634_p12 = scmp.ne.s32.totalorder %s828_s8, %s633_s23  ;;  %p641_p2 = scmp.lt.s32.totalorder %s639_s28, %s633_s23 }
  0x1d   : > { %p635_p13 = pnand %p634_p12, %p776_p4  ;;  %p642_p3 = por %p641_p2, %p640_p1 }
  0x1e   : > { %550 = vmatpush3.bf16.msra.mxu0 %v626_v3 }
  0x1f   : > { %551 = vmatprep.subr.bf16.mxu0 %v711_v1  ;;  %p636_p0 = pneg %p635_p13 }
  0x21   : > { %p643_p5 = pnand %p642_p3, %p636_p0 }
  0x22   : > { %552 = vmatpush3.bf16.msra.mxu0 %v627_v4 }
  0x23   : > { %553 = vmatprep.subr.bf16.mxu0 %v711_v1 }
  0x26   : > { %554 = vmatpush3.bf16.msra.mxu0 %v628_v5 }
  0x27   : > { %555 = vmatprep.subr.bf16.mxu0 %v711_v1 }
  0x2a   : > { %556 = vmatpush3.bf16.msra.mxu0 %v629_v6 }
  0x2b   : > { %557 = vmatprep.subr.bf16.mxu0 %v711_v1 }
  0x2e   : > { %558 = vmatpush3.bf16.msra.mxu0 %v630_v7 }
  0x2f   : > { %559 = vmatprep.subr.bf16.mxu0 %v711_v1 }
  0x32   : > { %560 = vmatpush3.bf16.msra.mxu0 %v631_v8 }
  0x35   : > { %562 = vmatmul.mubr.bf16.vlgmr.msra.gmra.mxu0 %v632_v9 }
  0xf5   : > { %v368_v11 = vpop.f32.mrf.mxu0 }
  0xf6   : > { %v369_v12 = vadd.f32 %v368_v11, %v278_v10 }
  0xf7   : > { %v563_v13 = vpop.f32.mrf.mxu0 }
  0xf8   : > { %375 = vst [vmem:[%s234_s7] sm:$0xff] %v369_v12 }
  0xf9   : > { %v371_v15 = vpop.f32.mrf.mxu0 }
  0xfa   : > { %v372_v16 = vadd.f32 %v371_v15, %v279_v14 }
  0xfb   : > { %v564_v17 = vpop.f32.mrf.mxu0 }
  0xfc   : > { %376 = vst [vmem:[%s234_s7 + $0x8] sm:$0xff] %v372_v16 }
  0xfd   : > { %646 = shalt.err (!%p643_p5)
}
  0xfe   : > { %s647_s29 = scalar_lea.hbm %s833_s21, 256  ;;  %s651_s5 = scalar_lea.hbm %s883_s3, 512 }
  0xff   : > { %p648_p6 = scmp.ne.s32.totalorder %s833_s21, %s647_s29  ;;  %p652_p10 = scmp.lt.s32.totalorder %s833_s21, %s883_s3 }
 0x100   : > { %p653_p11 = scmp.lt.s32.totalorder %s651_s5, %s647_s29 }
 0x101   : > { %p649_p7 = pnand %p648_p6, %p776_p4 }
 0x102   : > { %p654_p12 = por %p653_p11, %p652_p10 }
 0x103   : > { %p650_p9 = pneg %p649_p7 }
 0x105   : > { %p655_p13 = pnand %p654_p12, %p650_p9 }
 0x107   : > { %658 = shalt.err (!%p655_p13)
}
 0x108   : > { %s714_s10 = smov 128   ;;  %s715_s11 = smov 8  }
 0x109   : > { %565 = dma.vmem_to_hbm [thread:$0]  (%p776_p4), %s828_s8, 256, %s833_s21, %s835_s15, %s714_s10, %s714_s10, %s715_s11  }
 0x10a PF: > { %p571_p0 = scmp.ge.s32.totalorder %s709_s17, 2  ;;  %s409_s18 = sand.u32 1, %s689_s12  }
 0x10b   : > { %s410_s9 = scalar_lea.sflag [#allocation3], %s409_s18 }
 0x10c   : > { %p568_p1 = pnand %p571_p0, %p783_p8 }
 0x10e   : > { %p569_p2 = pneg %p568_p1 }
 0x110   : > { %684 = dma.done.wait (%p569_p2), %s410_s9, 256  }
 0x111   : > { %686 = vsyncadd (%p569_p2), %s410_s9, 4294967040  ;;  %s16_s17 = sadd.s32 1, %s709_s17   ;;  %s886_s12 = smov %s693_s13 }
 0x112   : > { %p13_p3 = scmp.ge.s32.totalorder %s16_s17, 4   ;;  %s887_s13 = smov %s697_s14 }
 0x113   : > { %s888_s14 = smov %s789_s25  ;;  %s889_s15 = smov %s705_s16 }
 0x114   : > { %s890_s16 = smov %s892_s20  ;;  %15 = sbr.rel (!%p13_p3) target bundleno = 4 (0x4), region = 73 }
 0x119   :  { %415 = vsyncpa [#allocation3], 1 }
 0x11a   :  { %417 = vsyncpa [#allocation3 + $0x1], 1 }

</bundles_post_ra>
